<compile_context>
chip_gen: v5e
topology: v5e:2x2
jax: 0.10.0
libtpu: 0.0.40
codegen_flags: <defaults>
</compile_context>

<pallas_src>
import jax
import jax.numpy as jnp
from jax.experimental import pallas as pl
from jax.experimental.pallas import tpu as pltpu


def channel_attention_kernel(x_ref, w1t_ref, w2t_ref, o_ref):
    # x_ref / o_ref: (TB, C, L) tile in native PyTorch layout — L on lanes.
    # w1t_ref: (C, H), w2t_ref: (H, C)  (pre-transposed, pre-cast weights).
    x = x_ref[...]                                   # native dtype — no full-tile upcast
    tb, _, l = x.shape

    # Adaptive avg/max pool over L (lane axis -> XLU reduce); mean accumulates in f32.
    avg = jnp.sum(x, axis=2, dtype=jnp.float32) * jnp.float32(1.0 / l)   # (TB, C)
    mx = jnp.max(x, axis=2).astype(jnp.float32)                          # (TB, C)

    # Fused FC bottleneck: one matmul pair on the stacked (avg ‖ max) matrix.
    # C is on lanes here, so both dots contract on the MXU.  Filler under DMA.
    pooled = jnp.concatenate([avg, mx], axis=0)                          # (2*TB, C)
    h = jnp.maximum(
        jnp.dot(pooled, w1t_ref[...], preferred_element_type=jnp.float32), 0.0)
    fc = jnp.dot(h, w2t_ref[...], preferred_element_type=jnp.float32)    # (2*TB, C)

    att = jax.nn.sigmoid(fc[:tb] + fc[tb:])                              # (TB, C)

    # Gate: broadcast over L (lanes); multiply in the input dtype -> lane-dense store.
    gate = att.astype(x.dtype)[:, :, None]                               # (TB, C, 1)
    o_ref[...] = (x * gate).astype(o_ref.dtype)


def _vmem_budget_bytes():
    """Bytes to spend on the (in + out) double-buffered activation tiles."""
    try:
        cap = pltpu.get_tpu_info().vmem_capacity_bytes   # 64 MiB v7x, 128 MiB v5e/v6e
    except Exception:
        cap = 64 << 20                                   # conservative (v7x) fallback
    # ~3/8 of physical for the activation buffers leaves headroom for the weight
    # blocks, the f32 pooled temporaries and Mosaic internal scratch.
    return max(8 << 20, (3 * cap) // 8)


def _pick_batch_tile(batch, c, l, itemsize, budget_bytes, *, min_steps=2):
    """Largest divisor of `batch` whose double-buffered in/out tiles fit the VMEM
    budget, while keeping >= `min_steps` grid steps (v7x megacore split +
    pipelining)."""
    per_batch_row = 4 * c * l * itemsize          # (in + out) x double buffer
    max_tb = max(1, budget_bytes // per_batch_row)
    if batch >= min_steps:
        max_tb = min(max_tb, batch // min_steps)
    max_tb = min(max_tb, batch)
    tb = 1
    for cand in range(1, int(max_tb) + 1):
        if batch % cand == 0:
            tb = cand
    return tb


def channel_attention(x, w1, w2):
    """x: (B, C, L) native PyTorch layout. w1: (H, C), w2: (C, H). Returns (B, C, L)."""
    B, C, L = x.shape
    H = w1.shape[0]
    itemsize = jnp.dtype(x.dtype).itemsize

    # Layout plumbing hoisted out of the kernel: pre-transposed, pre-cast weights.
    w1t = jnp.transpose(w1).astype(jnp.float32)   # (C, H)
    w2t = jnp.transpose(w2).astype(jnp.float32)   # (H, C)

    budget = _vmem_budget_bytes()
    tb = _pick_batch_tile(B, C, L, itemsize, budget)
    # TODO(synk): if even a single-batch-row tile (C*L) exceeds the budget, add an
    # L reduction grid axis ("arbitrary", last) accumulating sum/max into a (TB, C)
    # f32 scratch plus a second gating pass over L, instead of keeping all of L resident.

    # Raise the scoped VMEM limit (v5e default 16 MiB) but stay safe on v7x's 64 MiB.
    vmem_limit = int(min(56 << 20, budget + (16 << 20)))

    cost = pl.CostEstimate(
        flops=int(8 * B * C * H + 4 * B * C * L),
        transcendentals=int(B * C),
        bytes_accessed=int(2 * B * C * L * itemsize + 8 * C * H),
    )

    return pl.pallas_call(
        channel_attention_kernel,
        out_shape=jax.ShapeDtypeStruct((B, C, L), x.dtype),
        grid_spec=pltpu.PrefetchScalarGridSpec(
            num_scalar_prefetch=0,
            grid=(B // tb,),                      # batch-tiled; pipelined by BlockSpec
            in_specs=[
                pl.BlockSpec((tb, C, L), lambda b: (b, 0, 0)),
                pl.BlockSpec((C, H), lambda b: (0, 0)),   # weights resident across steps
                pl.BlockSpec((H, C), lambda b: (0, 0)),
            ],
            out_specs=pl.BlockSpec((tb, C, L), lambda b: (b, 0, 0)),
        ),
        compiler_params=pltpu.CompilerParams(
            dimension_semantics=("parallel",),    # megacore split on v7x
            vmem_limit_bytes=vmem_limit,
        ),
        cost_estimate=cost,
    )(x, w1t, w2t)


def channel_attention_ref(x, w1, w2):
    avg = jnp.mean(x, axis=2)
    mx = jnp.max(x, axis=2)

    def fc(v):
        return jnp.maximum(v @ w1.T, 0.0) @ w2.T

    att = jax.nn.sigmoid(fc(avg) + fc(mx))
    return x * att[:, :, None]


if __name__ == "__main__":
    # Shapes in the regime of middleCNN's channel attention: the gated feature map
    # is (B, 32, L) after conv1+pool1; L chosen as a multiple of 128 so the lane
    # axis is dense.  ChannelAttention(32) has reduction=16 -> hidden H = 2.
    B, C, L = 4, 32, 128
    reduction = 16
    H = C // reduction  # 2

    key = jax.random.PRNGKey(0)
    kx, k1, k2 = jax.random.split(key, 3)
    x = jax.random.normal(kx, (B, C, L), dtype=jnp.float32)
    # PyTorch Linear layout: (out_features, in_features)
    w1 = jax.random.normal(k1, (H, C), dtype=jnp.float32) * 0.1
    w2 = jax.random.normal(k2, (C, H), dtype=jnp.float32) * 0.1

    out = jax.block_until_ready(channel_attention(x, w1, w2))

    ref = channel_attention_ref(x, w1, w2)
    # MXU f32 pass configuration can differ slightly from XLA's reference dot.
    assert jnp.allclose(out, ref, atol=1e-3, rtol=1e-3), "mismatch vs reference"

    print("KERNEL_OK")
</pallas_src>

<mosaic_0001>
module attributes {stable_mosaic.version = 11 : i64} {
  func.func @channel_attention_kernel(%arg0: i32, %arg1: memref<2x32x128xf32, #tpu.memory_space<vmem>>, %arg2: memref<32x2xf32, #tpu.memory_space<vmem>>, %arg3: memref<2x32xf32, #tpu.memory_space<vmem>>, %arg4: memref<2x32x128xf32, #tpu.memory_space<vmem>>) attributes {dimension_semantics = [#tpu.dimension_semantics<parallel>], iteration_bounds = array<i64: 2>, scalar_prefetch = 0 : i64, scratch_operands = 0 : i64, tpu.core_type = #tpu.core_type<tc>, window_params = [{transform_indices = @transform_0, window_bounds = array<i64: 2, 32, 128>}, {pipeline_mode = #tpu.pipeline_mode<synchronous>, transform_indices = @transform_1, window_bounds = array<i64: 32, 2>}, {pipeline_mode = #tpu.pipeline_mode<synchronous>, transform_indices = @transform_2, window_bounds = array<i64: 2, 32>}, {transform_indices = @transform_3, window_bounds = array<i64: 2, 32, 128>}]} {
    %c0 = arith.constant 0 : index
    %c0_0 = arith.constant 0 : index
    %c0_1 = arith.constant 0 : index
    %0 = vector.load %arg1[%c0, %c0_0, %c0_1] : memref<2x32x128xf32, #tpu.memory_space<vmem>>, vector<2x32x128xf32>
    %cst = arith.constant dense<0.000000e+00> : vector<2x32xf32>
    %1 = vector.multi_reduction <add>, %0, %cst [2] : vector<2x32x128xf32> to vector<2x32xf32>
    %cst_2 = arith.constant 7.812500e-03 : f32
    %2 = vector.broadcast %cst_2 : f32 to vector<2x32xf32>
    %3 = arith.mulf %1, %2 : vector<2x32xf32>
    %cst_3 = arith.constant dense<0xFF800000> : vector<2x32xf32>
    %4 = vector.multi_reduction <maximumf>, %0, %cst_3 [2] : vector<2x32x128xf32> to vector<2x32xf32>
    %5 = tpu.concatenate %3, %4 in 0 : vector<2x32xf32>, vector<2x32xf32> -> vector<4x32xf32>
    %c0_4 = arith.constant 0 : index
    %c0_5 = arith.constant 0 : index
    %6 = vector.load %arg2[%c0_4, %c0_5] : memref<32x2xf32, #tpu.memory_space<vmem>>, vector<32x2xf32>
    %cst_6 = arith.constant dense<0.000000e+00> : vector<4x2xf32>
    %7 = tpu.matmul %5, %6, %cst_6 {dimension_numbers = #tpu.dot_dimension_numbers<[1], [0], [0], [1], [0, 0, 1, 1], [], []>} : vector<4x32xf32>, vector<32x2xf32>, vector<4x2xf32> -> vector<4x2xf32>
    %cst_7 = arith.constant 0.000000e+00 : f32
    %8 = vector.broadcast %cst_7 : f32 to vector<4x2xf32>
    %9 = arith.maximumf %7, %8 : vector<4x2xf32>
    %c0_8 = arith.constant 0 : index
    %c0_9 = arith.constant 0 : index
    %10 = vector.load %arg3[%c0_8, %c0_9] : memref<2x32xf32, #tpu.memory_space<vmem>>, vector<2x32xf32>
    %cst_10 = arith.constant dense<0.000000e+00> : vector<4x32xf32>
    %11 = tpu.matmul %9, %10, %cst_10 {dimension_numbers = #tpu.dot_dimension_numbers<[1], [0], [0], [1], [0, 0, 1, 1], [], []>} : vector<4x2xf32>, vector<2x32xf32>, vector<4x32xf32> -> vector<4x32xf32>
    %12 = vector.extract_strided_slice %11 {offsets = [0, 0], sizes = [2, 32], strides = [1, 1]} : vector<4x32xf32> to vector<2x32xf32>
    %13 = vector.extract_strided_slice %11 {offsets = [2, 0], sizes = [2, 32], strides = [1, 1]} : vector<4x32xf32> to vector<2x32xf32>
    %14 = arith.addf %12, %13 : vector<2x32xf32>
    %15 = arith.negf %14 : vector<2x32xf32>
    %16 = math.exp %15 : vector<2x32xf32>
    %cst_11 = arith.constant 1.000000e+00 : f32
    %17 = vector.broadcast %cst_11 : f32 to vector<2x32xf32>
    %18 = arith.addf %17, %16 : vector<2x32xf32>
    %19 = arith.divf %17, %18 : vector<2x32xf32>
    %20 = vector.shape_cast %19 : vector<2x32xf32> to vector<2x32x1xf32>
    %21 = vector.broadcast %20 : vector<2x32x1xf32> to vector<2x32x128xf32>
    %22 = arith.mulf %0, %21 : vector<2x32x128xf32>
    %c0_12 = arith.constant 0 : index
    %c0_13 = arith.constant 0 : index
    %c0_14 = arith.constant 0 : index
    %23 = vector.load %arg4[%c0_12, %c0_13, %c0_14] : memref<2x32x128xf32, #tpu.memory_space<vmem>>, vector<2x32x128xf32>
    tpu.vector_store %arg4[%c0_12, %c0_13, %c0_14], %22 {strides = array<i32>} : memref<2x32x128xf32, #tpu.memory_space<vmem>>, vector<2x32x128xf32>,
    return
  }
  func.func @transform_0(%arg0: i32) -> (i32, i32, i32) {
    %c0_i32 = arith.constant 0 : i32
    %c0_i32_0 = arith.constant 0 : i32
    %c0_i32_1 = arith.constant 0 : i32
    return %arg0, %c0_i32, %c0_i32_0 : i32, i32, i32
  }
  func.func @transform_1(%arg0: i32) -> (i32, i32) {
    %c0_i32 = arith.constant 0 : i32
    %c0_i32_0 = arith.constant 0 : i32
    %c0_i32_1 = arith.constant 0 : i32
    return %c0_i32, %c0_i32_0 : i32, i32
  }
  func.func @transform_2(%arg0: i32) -> (i32, i32) {
    %c0_i32 = arith.constant 0 : i32
    %c0_i32_0 = arith.constant 0 : i32
    %c0_i32_1 = arith.constant 0 : i32
    return %c0_i32, %c0_i32_0 : i32, i32
  }
  func.func @transform_3(%arg0: i32) -> (i32, i32, i32) {
    %c0_i32 = arith.constant 0 : i32
    %c0_i32_0 = arith.constant 0 : i32
    %c0_i32_1 = arith.constant 0 : i32
    return %arg0, %c0_i32, %c0_i32_0 : i32, i32, i32
  }
}

</mosaic_0001>

<bundles_post_ra>
// kernel: tpu_custom_call.1
= control target key start
LH: loop header
LB: loop body
LE: loop exit
PB: predicated region body
PF: predicated region fallthrough
CT: control target
= control target key end

     0   :  { %8 = vsyncpa [#allocation3], 0  ;;  %s946_s0 = inlined_call_operand.hbm [shape: f32[4,32,128], index: 0, kind: input, shape index: {}]   ;;  %s947_s1 = inlined_call_operand.vmem [shape: f32[32,2], index: 1, kind: input, shape index: {}]   ;;  %s948_s2 = inlined_call_operand.vmem [shape: f32[2,32], index: 2, kind: input, shape index: {}]   ;;  %s949_s3 = inlined_call_operand.hbm [shape: f32[4,32,128], index: 3, kind: output, shape index: {}]  }
   0x1   :  { %10 = vsyncpa [#allocation3 + $0x1], 0 }
   0x2   :  { %11 = vsyncpa [#allocation4], 0 }
   0x3   :  { %13 = vsyncpa [#allocation4 + $0x1], 0  ;;  %s746_s12 = smov 0   ;;  %s748_s13 = smov 0  }
   0x4   :  { %s750_s14 = smov 0   ;;  %s752_s15 = smov 0  }
   0x5 LB: > { %s767_s16 = sadd.s32 4294967295, %s720_s15   ;;  %s538_s17 = sadd.s32 4294967294, %s720_s15   ;;  %s720_s15 = sphi %s752_s15, %s959_s15   ;;  %s716_s14 = sphi %s750_s14, %s958_s14   ;;  %s712_s13 = sphi %s748_s13, %s957_s13   ;;  %s708_s12 = sphi %s746_s12, %s956_s12  }
   0x6   : > { %s771_s18 = sadd.s32 1, %s720_s15   ;;  %s26_s19 = sadd.s32 1, %s716_s14 }
   0x7   : > { %s23_s20 = ssub.s32 %s720_s15, %s771_s18  ;;  %p33_p0 = scmp.ne.s32.totalorder %s716_s14, %s712_s13 }
   0x8   : > { %p24_p1 = scmp.eq.s32.totalorder %s23_s20, 0  ;;  %p34_p2 = scmp.eq.s32.totalorder %s720_s15, 0 }
   0x9   : > { %p39_p3 = scmp.ne.s32.totalorder %s712_s13, %s708_s12  ;;  %p40_p4 = scmp.eq.s32.totalorder %s767_s16, 0 }
   0xa   : > { %s783_s21 = scalar_select %p24_p1, %s716_s14, %s26_s19  }
   0xb   : > { %p785_p5 = por %p34_p2, %p33_p0  ;;  %p789_p6 = por %p40_p4, %p39_p3 }
   0xc   : > { %p105_p7 = scmp.eq.s32.totalorder %s767_s16, 1  ;;  %p111_p8 = scmp.eq.s32.totalorder %s538_s17, 1 }
   0xd   : > { %p574_p10 = scmp.lt.s32.totalorder %s720_s15, 2  ;;  %s137_s26 = sand.u32 1, %s716_s14  }
   0xe   : > { %p796_p11 = por %p105_p7, %p33_p0  ;;  %p800_p12 = por %p111_p8, %p39_p3 }
   0xf   : > { %s559_s27 = sshll.u32 %s720_s15, 6  ;;  %s541_s28 = sshll.u32 %s137_s26, 6 }
  0x10   : > { %s147_s4 = scalar_lea.hbm %s946_s0, %s559_s27  ;;  %s141_s6 = scalar_lea.vmem [#allocation2], %s541_s28 }
  0x11   : > { %s148_s5 = sshll.u32 %s147_s4, 4  ;;  %s150_s7 = sshll.u32 %s141_s6, 4  ;;  %s149_s5 = int_to_ptr.hbm [resolvable:$true] %s148_s5  ;;  %s151_s7 = int_to_ptr.vmem [resolvable:$true] %s150_s7 }
  0x12   : > { %p811_p13 = pnand %p574_p10, %p785_p5  ;;  %p545_p0 = scmp.ge.s32.totalorder %s720_s15, 1 }
  0x13   : > { %p158_p1 = scmp.lt.s32.totalorder %s720_s15, 3  ;;  %s138_s9 = scalar_lea.sflag [#allocation3], %s137_s26 }
  0x14   : > { %s624_s10 = sshra.s32 %s149_s5, 4  ;;  %p628_p3 = pneg %p811_p13  ;;  %s625_s10 = int_to_ptr.hbm [resolvable:$true] %s624_s10 }
  0x15   : > { %s626_s11 = scalar_lea.hbm %s625_s10, 64  ;;  %s631_s20 = scalar_lea.hbm %s946_s0, 128 }
  0x16   : > { %p627_p2 = scmp.ne.s32.totalorder %s625_s10, %s626_s11  ;;  %p632_p5 = scmp.lt.s32.totalorder %s625_s10, %s946_s0 }
  0x17   : > { %p633_p8 = scmp.lt.s32.totalorder %s631_s20, %s626_s11 }
  0x18   : > { %p629_p4 = pnand %p628_p3, %p627_p2 }
  0x19   : > { %p634_p10 = por %p633_p8, %p632_p5 }
  0x1a   : > { %p630_p7 = pneg %p629_p4 }
  0x1c   : > { %p635_p9 = pnand %p634_p10, %p630_p7 }
  0x1e   : > { %638 = shalt.err (!%p635_p9)
}
  0x1f   : > { %s722_s26 = smov 128   ;;  %s723_s28 = smov 8  }
  0x20   : > { %569 = dma.hbm_to_vmem [thread:$0]  (!%p811_p13), %s149_s5, 1024, %s151_s7, %s138_s9, %s722_s26, %s722_s26, %s723_s28  }
  0x21   : > { %p159_p2 = pnand %p545_p0, %p158_p1 }
  0x22   : > { %s832_s29 = sand.u32 (!%p159_p2), 1, %s712_s13  }
  0x23   : > { %162 = sbr.rel (%p159_p2) target bundleno = 638 (0x27e), region = 32  ;;  %s546_s30 = sshll.u32 (!%p159_p2), %s832_s29, 6 }
  0x24   : > { %s165_s4 = scalar_lea.sflag (!%p159_p2), [#allocation3], %s832_s29  ;;  %s168_s6 = scalar_lea.vmem (!%p159_p2), [#allocation2], %s546_s30 }
  0x28   : > { %699 = dma.done.wait (%p789_p6), %s165_s4, 1024  }
  0x29   : > { %701 = vsyncadd (%p789_p6), %s165_s4, 4294966272  ;;  %v842_v0 = vld [vmem:[%s168_s6 + $0x20] sm:$0xff]  ;;  %v846_v2 = vld [vmem:[%s168_s6 + $0x10] sm:$0xff]  ;;  %v250_v21 = vlaneseq  ;;  %vm255_vm0 = vcmask 130112   ;;  %vm259_vm1 = vcmask 195712   ;;  %vm263_vm2 = vcmask 261312  }
  0x2a   : > { %v844_v1 = vld [vmem:[%s168_s6] sm:$0xff]  ;;  %210 = vadd.xlane.f32.xlu1 %v842_v0  ;;  %206 = vadd.xlane.f32.xlu2 %v846_v2  ;;  %v851_v3 = vld [vmem:[%s168_s6 + $0x28] sm:$0xff]  ;;  %v855_v5 = vld [vmem:[%s168_s6 + $0x30] sm:$0xff]  ;;  %vm272_vm3 = vcmask 1041409   ;;  %vm297_vm4 = vcmask 1043459   ;;  %vm300_vm5 = vcmask 1041408  }
  0x2b   : > { %202 = vadd.xlane.f32.xlu0 %v844_v1  ;;  %v853_v4 = vld [vmem:[%s168_s6 + $0x8] sm:$0xff]  ;;  %v860_v6 = vld [vmem:[%s168_s6 + $0x38] sm:$0xff]  ;;  %v304_v14 = vld [vmem:[%s947_s1 + $0x10] sm:$0xff]  ;;  %v251_v25 = vand.u32 127, %v250_v21  ;;  %vm306_vm6 = vcmask 261120   ;;  %vm332_vm7 = vcmask 15360  }
  0x2c   : > { %v862_v7 = vld [vmem:[%s168_s6 + $0x18] sm:$0xff]  ;;  %v303_v16 = vld [vmem:[%s947_s1 + $0x8] sm:$0xff]  ;;  %v302_v17 = vld [vmem:[%s947_s1] sm:$0xff]  ;;  %s191_s22 = scalar_lea.vmem [#allocation5], %s546_s30  ;;  %s561_s27 = sshll.u32 %s767_s16, 6 }
  0x2d   : > { %v305_v11 = vld [vmem:[%s947_s1 + $0x18] sm:$0xff]  ;;  %v253_v27 = vadd.s32 4294967288, %v251_v25  ;;  %v257_v31 = vadd.s32 4294967280, %v251_v25  ;;  %v261_v35 = vadd.s32 4294967272, %v251_v25  ;;  %s461_s30 = scalar_lea.hbm %s949_s3, %s561_s27  ;;  %s462_s4 = sshll.u32 %s191_s22, 4  ;;  %s463_s4 = int_to_ptr.vmem [resolvable:$true] %s462_s4 }
  0x2e   : > { %322 = vmatpush.msra.mxu0 %v305_v11  ;;  %s464_s6 = sshll.u32 %s461_s30, 4  ;;  %s449_s23 = scalar_lea.sflag [#allocation4], %s832_s29  ;;  %s465_s6 = int_to_ptr.hbm [resolvable:$true] %s464_s6 }
  0x2f   : > { %s668_s5 = sshra.s32 %s465_s6, 4  ;;  %s674_s9 = scalar_lea.hbm %s949_s3, 128  ;;  %s669_s5 = int_to_ptr.hbm [resolvable:$true] %s668_s5 }
  0x30   : > { %323 = vmatpush.msra.mxu0 %v304_v14  ;;  %s670_s16 = scalar_lea.hbm %s669_s5, 64  ;;  %p675_p0 = scmp.lt.s32.totalorder %s669_s5, %s949_s3 }
  0x31   : > { %p671_p6 = scmp.ne.s32.totalorder %s669_s5, %s670_s16  ;;  %p676_p1 = scmp.lt.s32.totalorder %s674_s9, %s670_s16 }
  0x32   : > { %212 = vadd.xlane.f32.xlu1 %v851_v3  ;;  %214 = vadd.xlane.f32.xlu2 %v855_v5 }
  0x33   : > { %204 = vadd.xlane.f32.xlu0 %v853_v4  ;;  %324 = vmatpush.msra.mxu0 %v303_v16  ;;  %v331_v16 = vld [vmem:[%s948_s2] sm:$0x3]  ;;  %p672_p9 = pnand %p671_p6, %p796_p11  ;;  %p677_p3 = por %p676_p1, %p675_p0 }
  0x34   : > { %549 = vmatpush.msk.msra.mxu1 %vm300_vm5, %v331_v16 }
  0x35   : > { %325 = vmatpush.msra.mxu0 %v302_v17  ;;  %p673_p13 = pneg %p672_p9 }
  0x37   : > { %p678_p4 = pnand %p677_p3, %p673_p13 }
  0x3a   : > { %216 = vadd.xlane.f32.xlu1 %v860_v6  ;;  %226 = vmax.xlane.f32.xlu2 %v844_v1 }
  0x3b   : > { %208 = vadd.xlane.f32.xlu0 %v862_v7 }
  0x42   : > { %234 = vmax.xlane.f32.xlu1 %v842_v0  ;;  %236 = vmax.xlane.f32.xlu2 %v851_v3 }
  0x43   : > { %228 = vmax.xlane.f32.xlu0 %v853_v4 }
  0x4a   : > { %238 = vmax.xlane.f32.xlu1 %v855_v5  ;;  %232 = vmax.xlane.f32.xlu2 %v862_v7 }
  0x4b   : > { %230 = vmax.xlane.f32.xlu0 %v846_v2 }
  0x53   : > { %240 = vmax.xlane.f32.xlu0 %v860_v6 }
  0x9d   : > { %v211_v8 = vpop.xlane.xlu1 %210  ;;  %v207_v10 = vpop.xlane.xlu2 %206 }
  0x9e   : > { %v203_v9 = vpop.xlane.xlu0 %202  ;;  %v222_v26 = vmul.f32 0.0078125, %v211_v8  ;;  %v220_v33 = vmul.f32 0.0078125, %v207_v10 }
  0x9f   : > { %v218_v30 = vmul.f32 0.0078125, %v203_v9 }
  0xa0   : > { %v265_v32 = vperm.slane %v222_v26, %v251_v25  ;;  %v258_v47 = vperm.slane %v220_v33, %v257_v31 }
  0xa1   : > { %v252_v41 = vperm.slane %v218_v30, %v251_v25 }
  0xa5   : > { %v213_v12 = vpop.xlane.xlu1 %212  ;;  %v215_v15 = vpop.xlane.xlu2 %214 }
  0xa6   : > { %v205_v13 = vpop.xlane.xlu0 %204  ;;  %v223_v28 = vmul.f32 0.0078125, %v213_v12  ;;  %v224_v34 = vmul.f32 0.0078125, %v215_v15 }
  0xa7   : > { %v219_v29 = vmul.f32 0.0078125, %v205_v13 }
  0xa8   : > { %v266_v37 = vperm.slane %v223_v28, %v253_v27  ;;  %v268_v48 = vperm.slane %v224_v34, %v257_v31 }
  0xa9   : > { %v254_v38 = vperm.slane %v219_v29, %v253_v27 }
  0xaa   : > { %v267_v51 = vsel %vm255_vm0, %v266_v37, %v265_v32 }
  0xab   : > { %v256_v52 = vsel %vm255_vm0, %v254_v38, %v252_v41  ;;  %v269_v59 = vsel %vm259_vm1, %v268_v48, %v267_v51 }
  0xac   : > { %v260_v62 = vsel %vm259_vm1, %v258_v47, %v256_v52 }
  0xad   : > { %v217_v18 = vpop.xlane.xlu1 %216  ;;  %v227_v20 = vpop.xlane.xlu2 %226 }
  0xae   : > { %v209_v19 = vpop.xlane.xlu0 %208  ;;  %v225_v39 = vmul.f32 0.0078125, %v217_v18  ;;  %v283_v42 = vperm.slane %v227_v20, %v251_v25 }
  0xaf   : > { %v221_v40 = vmul.f32 0.0078125, %v209_v19  ;;  %v384_v19 = vshrl.u32 %v250_v21, 7 }
  0xb0   : > { %v270_v53 = vperm.slane %v225_v39, %v261_v35 }
  0xb1   : > { %v262_v54 = vperm.slane %v221_v40, %v261_v35  ;;  %612 = vset.pattern.permute.xlu1 %v384_v19  ;;  %v397_v20 = vadd.s32 16, %v384_v19  ;;  %v403_v39 = vadd.s32 24, %v384_v19 }
  0xb2   : > { %v271_v9 = vsel %vm263_vm2, %v270_v53, %v269_v59 }
  0xb3   : > { %v264_v8 = vsel %vm263_vm2, %v262_v54, %v260_v62  ;;  %614 = vset.pattern.permute.xlu0 %v397_v20 }
  0xb4   : > { %v273_v13 = vsel %vm272_vm3, %v271_v9, %v264_v8 }
  0xb5   : > { %v235_v23 = vpop.xlane.xlu1 %234  ;;  %v237_v24 = vpop.xlane.xlu2 %236 }
  0xb6   : > { %v229_v22 = vpop.xlane.xlu0 %228  ;;  %v290_v43 = vperm.slane %v235_v23, %v251_v25  ;;  %v291_v45 = vperm.slane %v237_v24, %v253_v27 }
  0xb7   : > { %v284_v44 = vperm.slane %v229_v22, %v253_v27  ;;  %v391_v22 = vadd.s32 8, %v384_v19 }
  0xb8   : > { %v292_v57 = vsel %vm255_vm0, %v291_v45, %v290_v43 }
  0xb9   : > { %v285_v56 = vsel %vm255_vm0, %v284_v44, %v283_v42  ;;  %613 = vset.pattern.permute.xlu2 %v391_v22 }
  0xbd   : > { %v239_v46 = vpop.xlane.xlu1 %238  ;;  %v233_v50 = vpop.xlane.xlu2 %232 }
  0xbe   : > { %v231_v36 = vpop.xlane.xlu0 %230  ;;  %v293_v55 = vperm.slane %v239_v46, %v257_v31  ;;  %v288_v58 = vperm.slane %v233_v50, %v261_v35 }
  0xbf   : > { %v286_v49 = vperm.slane %v231_v36, %v257_v31 }
  0xc0   : > { %v294_v10 = vsel %vm259_vm1, %v293_v55, %v292_v57 }
  0xc1   : > { %v287_v60 = vsel %vm259_vm1, %v286_v49, %v285_v56 }
  0xc2   : > { %v289_v11 = vsel %vm263_vm2, %v288_v58, %v287_v60 }
  0xc6   : > { %v241_v61 = vpop.xlane.xlu0 %240 }
  0xc7   : > { %v295_v63 = vperm.slane %v241_v61, %v261_v35 }
  0xc9   : > { %v296_v12 = vsel %vm263_vm2, %v295_v63, %v294_v10 }
  0xca   : > { %v298_v14 = vsel %vm297_vm4, %v296_v12, %v289_v11 }
  0xcb   : > { %v301_v15 = vsel %vm300_vm5, %v273_v13, %v298_v14 }
  0xcc   : > { %548 = vmatmul.msk.f32.vlgmr.msra.gmra.mxu0 %vm306_vm6, %v301_v15 }
 0x149   : > { %v327_v17 = vpop.f32.mrf.mxu0 }
 0x14a   : > { %v330_v18 = vmax.f32 %v327_v17, 0.0 }
 0x14c   : > { %550 = vmatmul.msk.f32.vlgmr.msra.gmra.mxu1 %vm332_vm7, %v330_v18 }
 0x1c9   : > { %v356_v23 = vpop.f32.mrf.mxu1 }
 0x1ca   : > { %v360_v24 = vrot.slane %v356_v23, 2 }
 0x1cc   : > { %v362_v25 = vadd.f32 %v360_v24, %v356_v23 }
 0x1ce   : > { %v551_v26 = vmul.f32 -1.442695, %v362_v25 }
 0x1d0   : > { %620 = vpow2.f32 %v551_v26 }
 0x1d6   : > { %v621_v27 = vpop.eup %620 }
 0x1d7   : > { %v366_v28 = vadd.f32 1.0, %v621_v27 }
 0x1d9   : > { %622 = vrcp.f32 %v366_v28  ;;  %v378_v32 = vand.u32 2147483648, %v366_v28  ;;  %v376_v21 = vand.u32 2147483647, %v366_v28  ;;  %vm372_vm9 = vweird.f32 %v366_v28 }
 0x1db   : > { %v379_v35 = vor.u32 1.1754944e-38, %v378_v32  ;;  %vm377_vm11 = vcmp.eq.f32.partialorder %v376_v21, 8.507059e+37 }
 0x1df   : > { %v623_v29 = vpop.eup %622 }
 0x1e0   : > { %v368_v30 = vmul.f32 %v623_v29, %v366_v28  ;;  %vm373_vm8 = vweird.f32 %v623_v29 }
 0x1e1   : > { %vm374_vm10 = vmor %vm372_vm9, %vm373_vm8 }
 0x1e2   : > { %v369_v31 = vsub.f32 1.0, %v368_v30 }
 0x1e4   : > { %v370_v33 = vmul.f32 %v623_v29, %v369_v31 }
 0x1e6   : > { %v371_v34 = vadd.f32 %v623_v29, %v370_v33 }
 0x1e8   : > { %v375_v36 = vsel %vm374_vm10, %v623_v29, %v371_v34 }
 0x1e9   : > { %v380_v37 = vsel %vm377_vm11, %v379_v35, %v375_v36 }
 0x1ea   : > { %v382_v38 = vperm.slane %v380_v37, 0  ;;  %v407_v40 = vperm.slane %v380_v37, 1 }
 0x1ec   : > { %399 = vperm.xlu0 %614, %v382_v38   ;;  %393 = vperm.xlu2 %613, %v382_v38  }
 0x1ed   : > { %387 = vperm.xlu1 %612, %v382_v38  }
 0x1f4   : > { %615 = vset.pattern.permute.xlu2 %v403_v39  ;;  %619 = vset.pattern.permute.xlu0 %v403_v39 }
 0x1f5   : > { %412 = vperm.xlu1 %612, %v407_v40  }
 0x1fc   : > { %405 = vperm.xlu2 %615, %v382_v38  }
 0x1fd   : > { %617 = vset.pattern.permute.xlu1 %v397_v20 }
 0x204   : > { %616 = vset.pattern.permute.xlu2 %v391_v22 }
 0x205   : > { %424 = vperm.xlu1 %617, %v407_v40  }
 0x20c   : > { %418 = vperm.xlu2 %616, %v407_v40  }
 0x214   : > { %618 = vset.pattern.permute.xlu2 %v403_v39 }
 0x21c   : > { %430 = vperm.xlu2 %618, %v407_v40  }
 0x246   : > { %v394_v41 = vpop.permute.xlu2 %393 }
 0x247   : > { %v433_v42 = vmul.f32 %v394_v41, %v853_v4 }
 0x249   : > { %441 = vst [vmem:[%s191_s22 + $0x8] sm:$0xff] %v433_v42 }
 0x256   : > { %v406_v43 = vpop.permute.xlu2 %405 }
 0x257   : > { %v435_v44 = vmul.f32 %v406_v43, %v862_v7 }
 0x259   : > { %443 = vst [vmem:[%s191_s22 + $0x18] sm:$0xff] %v435_v44 }
 0x25e   : > { %v400_v45 = vpop.permute.xlu0 %399 }
 0x25f   : > { %v434_v46 = vmul.f32 %v400_v45, %v846_v2  ;;  %v388_v47 = vpop.permute.xlu1 %387 }
 0x260   : > { %v432_v48 = vmul.f32 %v388_v47, %v844_v1 }
 0x261   : > { %442 = vst [vmem:[%s191_s22 + $0x10] sm:$0xff] %v434_v46 }
 0x262   : > { %440 = vst [vmem:[%s191_s22] sm:$0xff] %v432_v48 }
 0x266   : > { %v419_v49 = vpop.permute.xlu2 %418 }
 0x267   : > { %v437_v50 = vmul.f32 %v419_v49, %v851_v3  ;;  %v413_v4 = vpop.permute.xlu1 %412 }
 0x268   : > { %v436_v51 = vmul.f32 %v413_v4, %v842_v0 }
 0x269   : > { %445 = vst [vmem:[%s191_s22 + $0x28] sm:$0xff] %v437_v50 }
 0x26a   : > { %444 = vst [vmem:[%s191_s22 + $0x20] sm:$0xff] %v436_v51 }
 0x276   : > { %v431_v1 = vpop.permute.xlu2 %430 }
 0x277   : > { %v439_v2 = vmul.f32 %v431_v1, %v860_v6  ;;  %v425_v7 = vpop.permute.xlu1 %424 }
 0x278   : > { %v438_v3 = vmul.f32 %v425_v7, %v855_v5 }
 0x279   : > { %447 = vst [vmem:[%s191_s22 + $0x38] sm:$0xff] %v439_v2 }
 0x27a   : > { %446 = vst [vmem:[%s191_s22 + $0x30] sm:$0xff] %v438_v3 }
 0x27b   : > { %681 = shalt.err (!%p678_p4)
}
 0x27c   : > { %s724_s29 = smov 128   ;;  %s725_s17 = smov 8  }
 0x27d   : > { %564 = dma.vmem_to_hbm [thread:$0]  (%p796_p11), %s463_s4, 1024, %s465_s6, %s449_s23, %s724_s29, %s724_s29, %s725_s17  }
 0x27e PF: > { %s479_s19 = sand.u32 1, %s708_s12   ;;  %p955_p7 = scmp.ge.s32.totalorder %s720_s15, 2 }
 0x27f   : > { %s480_s20 = scalar_lea.sflag [#allocation4], %s479_s19 }
 0x280   : > { %p571_p5 = pnand %p955_p7, %p800_p12 }
 0x282   : > { %p572_p8 = pneg %p571_p5 }
 0x284   : > { %703 = dma.done.wait (%p572_p8), %s480_s20, 1024  }
 0x285   : > { %705 = vsyncadd (%p572_p8), %s480_s20, 4294966272  ;;  %p16_p10 = scmp.ge.s32.totalorder %s771_s18, 4   ;;  %s956_s12 = smov %s712_s13 }
 0x286   : > { %s957_s13 = smov %s716_s14  ;;  %s958_s14 = smov %s783_s21 }
 0x287   : > { %s959_s15 = smov %s771_s18  ;;  %18 = sbr.rel (!%p16_p10) target bundleno = 5 (0x5), region = 77 }
 0x28c   :  { %486 = vsyncpa [#allocation3], 1 }
 0x28d   :  { %488 = vsyncpa [#allocation3 + $0x1], 1 }
 0x28e   :  { %489 = vsyncpa [#allocation4], 1 }
 0x28f   :  { %491 = vsyncpa [#allocation4 + $0x1], 1 }

</bundles_post_ra>
